<compile_context>
chip_gen: v7x
topology: tpu7x:2x2x1
jax: 0.10.0
libtpu: 0.0.40
codegen_flags: <defaults>
</compile_context>

<pallas_src>
import functools

import jax
import jax.numpy as jnp
from jax.experimental import pallas as pl
from jax.experimental.pallas import tpu as pltpu


def sac_critic_kernel(s_ref, a_ref,
                      w1_ref, b1_ref,
                      w2_ref, b2_ref,
                      w3_ref, b3_ref,
                      out_ref,
                      x_scr):
    obs = s_ref.shape[1]

    # ---- x = concat([state, action], -1), built in VMEM scratch (replaces both
    # torch.cat and the previous split-K layer-1 matmul). Static lane ranges. ----
    x_scr[:, :obs] = s_ref[...]
    x_scr[:, obs:] = a_ref[...]
    x_bf = x_scr[...].astype(jnp.bfloat16)

    # ---- Layer 1: single K=32 MXU pass, f32 accumulation ----
    h = jnp.dot(x_bf, w1_ref[...], preferred_element_type=jnp.float32) + b1_ref[...]
    h = jnp.maximum(h, 0.0)

    # ---- Layer 2 (hidden_layer_size=2 -> one extra 256x256 fc) ----
    h = jnp.dot(h.astype(jnp.bfloat16), w2_ref[...],
                preferred_element_type=jnp.float32) + b2_ref[...]
    h = jnp.maximum(h, 0.0)

    # ---- Head (256 -> 1): VPU multiply + lane reduction, not an N=1 MXU pass ----
    q = jnp.sum(h * w3_ref[...], axis=-1, keepdims=True) + b3_ref[...]
    out_ref[...] = q.astype(out_ref.dtype)


def _cdiv(a, b):
    return -(-a // b)


def _round_up(x, m):
    return _cdiv(x, m) * m


@functools.partial(jax.jit, static_argnames=("tile_b",))
def sac_critic_forward(state, action, params, tile_b=1024):
    """state: (B, obs), action: (B, act) -> (B, 1) float32."""
    w1, b1, w2, b2, w3, b3 = params
    B, obs = state.shape
    act = action.shape[1]
    in_dim = obs + act

    # Wrapper-side weight prep (once per trace): matmul weights in bf16, head
    # row + all biases in f32 (head runs on the VPU).
    w1_bf = w1.astype(jnp.bfloat16)                  # (obs+act, node)
    w2_bf = w2.astype(jnp.bfloat16)                  # (node, node)
    w3_row = w3.reshape(1, -1).astype(jnp.float32)   # (1, node)
    b3_2d = b3.reshape(1, 1).astype(jnp.float32)     # (1, 1)

    # Batch tiling: tile is a multiple of 8 (sublane); NO batch padding — the
    # trailing grid step may use a partial block (OOB rows: garbage in,
    # discarded on write). With >1 step, rebalance to an even number of
    # near-equal tiles (v7x megacore balance + less wasted compute everywhere).
    tb = max(8, int(min(tile_b, _round_up(B, 8))))
    num_tiles = _cdiv(B, tb)
    if num_tiles > 1:
        if num_tiles % 2:
            num_tiles += 1
        tb = int(_round_up(_cdiv(B, num_tiles), 8))
    grid = (_cdiv(B, tb),)

    def rows(cols):
        return pl.BlockSpec((tb, cols), lambda i: (i, 0))

    def full(arr):
        # Weights / biases: one block == whole array; constant index_map keeps
        # them VMEM-resident (never re-DMA'd across grid steps).
        return pl.BlockSpec(arr.shape, lambda i: (0, 0))

    out = pl.pallas_call(
        sac_critic_kernel,
        out_shape=jax.ShapeDtypeStruct((B, 1), jnp.float32),
        grid=grid,
        in_specs=[
            rows(obs), rows(act),
            full(w1_bf), full(b1),
            full(w2_bf), full(b2),
            full(w3_row), full(b3_2d),
        ],
        out_specs=pl.BlockSpec((tb, 1), lambda i: (i, 0)),
        scratch_shapes=[pltpu.VMEM((tb, in_dim), jnp.float32)],
        compiler_params=pltpu.CompilerParams(
            dimension_semantics=("parallel",)),
    )(state, action, w1_bf, b1, w2_bf, b2, w3_row, b3_2d)
    return out


def init_params(key, obs_size, action_size, node_size=256):
    """Deterministic init mimicking nn.Linear (uniform +/- 1/sqrt(fan_in)).
    Weights stored as (in, out); PyTorch stores (out, in) — same math."""
    def linear(k, fan_in, fan_out):
        kw, kb = jax.random.split(k)
        bound = 1.0 / jnp.sqrt(jnp.float32(fan_in))
        w = jax.random.uniform(kw, (fan_in, fan_out), jnp.float32, -bound, bound)
        b = jax.random.uniform(kb, (1, fan_out), jnp.float32, -bound, bound)
        return w, b

    k1, k2, k3 = jax.random.split(key, 3)
    in_dim = obs_size + action_size
    w1, b1 = linear(k1, in_dim, node_size)
    w2, b2 = linear(k2, node_size, node_size)
    w3, b3 = linear(k3, node_size, 1)
    return (w1, b1, w2, b2, w3, b3)


def sac_critic_reference(state, action, params):
    """Pure-JAX f32 reference (matches the PyTorch forward)."""
    w1, b1, w2, b2, w3, b3 = params
    x = jnp.concatenate([state, action], axis=-1)
    h = jnp.maximum(x @ w1 + b1, 0.0)
    h = jnp.maximum(h @ w2 + b2, 0.0)
    return h @ w3 + b3


if __name__ == "__main__":
    key = jax.random.PRNGKey(0)
    k_s, k_a, k_p = jax.random.split(key, 3)

    obs_size, action_size, node_size = 24, 8, 256
    params = init_params(k_p, obs_size, action_size, node_size)

    # Small-shape check (single grid step, tile clipped to 8 rows).
    B = 8
    state = jax.random.normal(k_s, (B, obs_size), jnp.float32)
    action = jax.random.normal(k_a, (B, action_size), jnp.float32)
    q = jax.block_until_ready(sac_critic_forward(state, action, params))
    q_ref = sac_critic_reference(state, action, params)
    assert q.shape == (B, 1)
    # bf16 matmuls (f32 accumulation) -> relaxed tolerance vs f32 reference.
    assert jnp.allclose(q, q_ref, atol=3e-2, rtol=3e-2)

    # Batch not divisible by 8 or the tile: exercises the even-grid rebalance
    # (grid=(2,), tile=528) and the partial trailing block (no padding at all).
    B2 = 1043
    k_s2, k_a2 = jax.random.split(jax.random.PRNGKey(1))
    state2 = jax.random.normal(k_s2, (B2, obs_size), jnp.float32)
    action2 = jax.random.normal(k_a2, (B2, action_size), jnp.float32)
    q2 = jax.block_until_ready(sac_critic_forward(state2, action2, params))
    q2_ref = sac_critic_reference(state2, action2, params)
    assert q2.shape == (B2, 1)
    assert jnp.allclose(q2, q2_ref, atol=3e-2, rtol=3e-2)

    print("KERNEL_OK")
</pallas_src>

<mosaic_0001>
module attributes {stable_mosaic.version = 11 : i64} {
  func.func @sac_critic_kernel(%arg0: i32, %arg1: memref<8x24xf32, #tpu.memory_space<vmem>>, %arg2: memref<8x8xf32, #tpu.memory_space<vmem>>, %arg3: memref<32x256xbf16, #tpu.memory_space<vmem>>, %arg4: memref<1x256xf32, #tpu.memory_space<vmem>>, %arg5: memref<256x256xbf16, #tpu.memory_space<vmem>>, %arg6: memref<1x256xf32, #tpu.memory_space<vmem>>, %arg7: memref<1x256xf32, #tpu.memory_space<vmem>>, %arg8: memref<1x1xf32, #tpu.memory_space<vmem>>, %arg9: memref<8x1xf32, #tpu.memory_space<vmem>>, %arg10: memref<8x32xf32, #tpu.memory_space<vmem>>) attributes {dimension_semantics = [#tpu.dimension_semantics<parallel>], iteration_bounds = array<i64: 1>, scalar_prefetch = 0 : i64, scratch_operands = 1 : i64, tpu.core_type = #tpu.core_type<tc>, window_params = [{transform_indices = @transform_0, window_bounds = array<i64: 8, 24>}, {transform_indices = @transform_1, window_bounds = array<i64: 8, 8>}, {pipeline_mode = #tpu.pipeline_mode<synchronous>, transform_indices = @transform_2, window_bounds = array<i64: 32, 256>}, {pipeline_mode = #tpu.pipeline_mode<synchronous>, transform_indices = @transform_3, window_bounds = array<i64: 1, 256>}, {pipeline_mode = #tpu.pipeline_mode<synchronous>, transform_indices = @transform_4, window_bounds = array<i64: 256, 256>}, {pipeline_mode = #tpu.pipeline_mode<synchronous>, transform_indices = @transform_5, window_bounds = array<i64: 1, 256>}, {pipeline_mode = #tpu.pipeline_mode<synchronous>, transform_indices = @transform_6, window_bounds = array<i64: 1, 256>}, {pipeline_mode = #tpu.pipeline_mode<synchronous>, transform_indices = @transform_7, window_bounds = array<i64: 1, 1>}, {transform_indices = @transform_8, window_bounds = array<i64: 8, 1>}]} {
    %c0 = arith.constant 0 : index
    %c0_0 = arith.constant 0 : index
    %0 = vector.load %arg1[%c0, %c0_0] : memref<8x24xf32, #tpu.memory_space<vmem>>, vector<8x24xf32>
    %c0_1 = arith.constant 0 : index
    %c0_2 = arith.constant 0 : index
    %1 = vector.load %arg10[%c0_1, %c0_2] : memref<8x32xf32, #tpu.memory_space<vmem>>, vector<8x24xf32>
    tpu.vector_store %arg10[%c0_1, %c0_2], %0 {strides = array<i32>} : memref<8x32xf32, #tpu.memory_space<vmem>>, vector<8x24xf32>,
    %c0_3 = arith.constant 0 : index
    %c0_4 = arith.constant 0 : index
    %2 = vector.load %arg2[%c0_3, %c0_4] : memref<8x8xf32, #tpu.memory_space<vmem>>, vector<8x8xf32>
    %c0_5 = arith.constant 0 : index
    %c24 = arith.constant 24 : index
    %3 = vector.load %arg10[%c0_5, %c24] : memref<8x32xf32, #tpu.memory_space<vmem>>, vector<8x8xf32>
    tpu.vector_store %arg10[%c0_5, %c24], %2 {strides = array<i32>} : memref<8x32xf32, #tpu.memory_space<vmem>>, vector<8x8xf32>,
    %c0_6 = arith.constant 0 : index
    %c0_7 = arith.constant 0 : index
    %4 = vector.load %arg10[%c0_6, %c0_7] : memref<8x32xf32, #tpu.memory_space<vmem>>, vector<8x32xf32>
    %5 = arith.truncf %4 : vector<8x32xf32> to vector<8x32xbf16>
    %c0_8 = arith.constant 0 : index
    %c0_9 = arith.constant 0 : index
    %6 = vector.load %arg3[%c0_8, %c0_9] : memref<32x256xbf16, #tpu.memory_space<vmem>>, vector<32x256xbf16>
    %cst = arith.constant dense<0.000000e+00> : vector<8x256xf32>
    %7 = tpu.matmul %5, %6, %cst {dimension_numbers = #tpu.dot_dimension_numbers<[1], [0], [0], [1], [0, 0, 1, 1], [], []>} : vector<8x32xbf16>, vector<32x256xbf16>, vector<8x256xf32> -> vector<8x256xf32>
    %c0_10 = arith.constant 0 : index
    %c0_11 = arith.constant 0 : index
    %8 = vector.load %arg4[%c0_10, %c0_11] : memref<1x256xf32, #tpu.memory_space<vmem>>, vector<1x256xf32>
    %9 = vector.broadcast %8 : vector<1x256xf32> to vector<8x256xf32>
    %10 = arith.addf %7, %9 : vector<8x256xf32>
    %cst_12 = arith.constant 0.000000e+00 : f32
    %11 = vector.broadcast %cst_12 : f32 to vector<8x256xf32>
    %12 = arith.maximumf %10, %11 : vector<8x256xf32>
    %13 = arith.truncf %12 : vector<8x256xf32> to vector<8x256xbf16>
    %c0_13 = arith.constant 0 : index
    %c0_14 = arith.constant 0 : index
    %14 = vector.load %arg5[%c0_13, %c0_14] : memref<256x256xbf16, #tpu.memory_space<vmem>>, vector<256x256xbf16>
    %cst_15 = arith.constant dense<0.000000e+00> : vector<8x256xf32>
    %15 = tpu.matmul %13, %14, %cst_15 {dimension_numbers = #tpu.dot_dimension_numbers<[1], [0], [0], [1], [0, 0, 1, 1], [], []>} : vector<8x256xbf16>, vector<256x256xbf16>, vector<8x256xf32> -> vector<8x256xf32>
    %c0_16 = arith.constant 0 : index
    %c0_17 = arith.constant 0 : index
    %16 = vector.load %arg6[%c0_16, %c0_17] : memref<1x256xf32, #tpu.memory_space<vmem>>, vector<1x256xf32>
    %17 = vector.broadcast %16 : vector<1x256xf32> to vector<8x256xf32>
    %18 = arith.addf %15, %17 : vector<8x256xf32>
    %cst_18 = arith.constant 0.000000e+00 : f32
    %19 = vector.broadcast %cst_18 : f32 to vector<8x256xf32>
    %20 = arith.maximumf %18, %19 : vector<8x256xf32>
    %c0_19 = arith.constant 0 : index
    %c0_20 = arith.constant 0 : index
    %21 = vector.load %arg7[%c0_19, %c0_20] : memref<1x256xf32, #tpu.memory_space<vmem>>, vector<1x256xf32>
    %22 = vector.broadcast %21 : vector<1x256xf32> to vector<8x256xf32>
    %23 = arith.mulf %20, %22 : vector<8x256xf32>
    %cst_21 = arith.constant dense<0.000000e+00> : vector<8xf32>
    %24 = vector.multi_reduction <add>, %23, %cst_21 [1] : vector<8x256xf32> to vector<8xf32>
    %25 = vector.shape_cast %24 : vector<8xf32> to vector<8x1xf32>
    %c0_22 = arith.constant 0 : index
    %c0_23 = arith.constant 0 : index
    %26 = vector.load %arg8[%c0_22, %c0_23] : memref<1x1xf32, #tpu.memory_space<vmem>>, vector<1x1xf32>
    %27 = vector.broadcast %26 : vector<1x1xf32> to vector<8x1xf32>
    %28 = arith.addf %25, %27 : vector<8x1xf32>
    %c0_24 = arith.constant 0 : index
    %c0_25 = arith.constant 0 : index
    %29 = vector.load %arg9[%c0_24, %c0_25] : memref<8x1xf32, #tpu.memory_space<vmem>>, vector<8x1xf32>
    tpu.vector_store %arg9[%c0_24, %c0_25], %28 {strides = array<i32>} : memref<8x1xf32, #tpu.memory_space<vmem>>, vector<8x1xf32>,
    return
  }
  func.func @transform_0(%arg0: i32) -> (i32, i32) {
    %c0_i32 = arith.constant 0 : i32
    %c0_i32_0 = arith.constant 0 : i32
    return %arg0, %c0_i32 : i32, i32
  }
  func.func @transform_1(%arg0: i32) -> (i32, i32) {
    %c0_i32 = arith.constant 0 : i32
    %c0_i32_0 = arith.constant 0 : i32
    return %arg0, %c0_i32 : i32, i32
  }
  func.func @transform_2(%arg0: i32) -> (i32, i32) {
    %c0_i32 = arith.constant 0 : i32
    %c0_i32_0 = arith.constant 0 : i32
    %c0_i32_1 = arith.constant 0 : i32
    return %c0_i32, %c0_i32_0 : i32, i32
  }
  func.func @transform_3(%arg0: i32) -> (i32, i32) {
    %c0_i32 = arith.constant 0 : i32
    %c0_i32_0 = arith.constant 0 : i32
    %c0_i32_1 = arith.constant 0 : i32
    return %c0_i32, %c0_i32_0 : i32, i32
  }
  func.func @transform_4(%arg0: i32) -> (i32, i32) {
    %c0_i32 = arith.constant 0 : i32
    %c0_i32_0 = arith.constant 0 : i32
    %c0_i32_1 = arith.constant 0 : i32
    return %c0_i32, %c0_i32_0 : i32, i32
  }
  func.func @transform_5(%arg0: i32) -> (i32, i32) {
    %c0_i32 = arith.constant 0 : i32
    %c0_i32_0 = arith.constant 0 : i32
    %c0_i32_1 = arith.constant 0 : i32
    return %c0_i32, %c0_i32_0 : i32, i32
  }
  func.func @transform_6(%arg0: i32) -> (i32, i32) {
    %c0_i32 = arith.constant 0 : i32
    %c0_i32_0 = arith.constant 0 : i32
    %c0_i32_1 = arith.constant 0 : i32
    return %c0_i32, %c0_i32_0 : i32, i32
  }
  func.func @transform_7(%arg0: i32) -> (i32, i32) {
    %c0_i32 = arith.constant 0 : i32
    %c0_i32_0 = arith.constant 0 : i32
    %c0_i32_1 = arith.constant 0 : i32
    return %c0_i32, %c0_i32_0 : i32, i32
  }
  func.func @transform_8(%arg0: i32) -> (i32, i32) {
    %c0_i32 = arith.constant 0 : i32
    %c0_i32_0 = arith.constant 0 : i32
    return %arg0, %c0_i32 : i32, i32
  }
}

</mosaic_0001>

<bundles_post_ra>
// kernel: sac_critic_forward.1
= control target key start
LH: loop header
LB: loop body
LE: loop exit
PB: predicated region body
PF: predicated region fallthrough
CT: control target
= control target key end

     0   :  { %vm33_vm0 = vcmask 195584   ;;  %v501_v2 = vmov 0   ;;  %s502_s9 = smov 24   ;;  %vm40_vm1 = vcmask 261312   ;;  %vm80_vm2 = vcmask 261120   ;;  %s677_s1 = inlined_call_operand.vmem [shape: f32[8,8], index: 1, kind: input, shape index: {}]   ;;  %s678_s0 = inlined_call_operand.vmem [shape: f32[8,24], index: 0, kind: input, shape index: {}]   ;;  %s679_s2 = inlined_call_operand.vmem [shape: bf16[32,256], index: 2, kind: input, shape index: {}]   ;;  %s680_s4 = inlined_call_operand.vmem [shape: bf16[256,256], index: 4, kind: input, shape index: {}]   ;;  %s681_s3 = inlined_call_operand.vmem [shape: f32[1,256], index: 3, kind: input, shape index: {}]   ;;  %s682_s7 = inlined_call_operand.<no memory space> [shape: f32[1,1], index: 7, kind: input, shape index: {}]   ;;  %s683_s5 = inlined_call_operand.vmem [shape: f32[1,256], index: 5, kind: input, shape index: {}]   ;;  %s684_s6 = inlined_call_operand.vmem [shape: f32[1,256], index: 6, kind: input, shape index: {}]   ;;  %s685_s8 = inlined_call_operand.vmem [shape: f32[8,1], index: 8, kind: output, shape index: {}]  }
   0x1   :  { %v35_v0 = vld [vmem:[%s677_s1] sm:$0xff]  ;;  %116 = vmatprep.mubr.bf16.mxu0 %v501_v2  ;;  %v450_v5 = vld [vmem:[%s679_s2 + $0x14] ss:$8 sps:$4 sm:$0xff]   ;;  %v452_v6 = vld [vmem:[%s679_s2 + $0x10] ss:$8 sps:$4 sm:$0xff]   ;;  %v50_v42 = vlaneseq  ;;  %v13_v59 = vstv %s682_s7  ;;  %vm401_vm3 = vcmask 7168  }
   0x2   :  { %v32_v1 = vld [vmem:[%s678_s0] sm:$0xff]  ;;  %37 = vrot.lane.b32.xlu0 %v35_v0, %s502_s9  ;;  %v456_v9 = vld [vmem:[%s680_s4 + $0x14] ss:$8 sps:$4 sm:$0xff]   ;;  %v458_v10 = vld [vmem:[%s680_s4 + $0x10] ss:$8 sps:$4 sm:$0xff]  }
   0x3   :  { %34 = vst.msk [vmem:[#allocation2] sm:$0xff] %vm33_vm0, %v32_v1  ;;  %v447_v3 = vld [vmem:[%s679_s2 + $0x4] ss:$8 sps:$4 sm:$0xff]   ;;  %v449_v4 = vld [vmem:[%s679_s2] ss:$8 sps:$4 sm:$0xff]   ;;  %v51_v43 = vshrl.u32 %v50_v42, 7 }
   0x4   :  { %84 = vmatprep.subr.bf16.mxu0 %v447_v3  ;;  %v453_v7 = vld [vmem:[%s680_s4 + $0x4] ss:$8 sps:$4 sm:$0xff]   ;;  %v455_v8 = vld [vmem:[%s680_s4] ss:$8 sps:$4 sm:$0xff]   ;;  %v462_v13 = vld [vmem:[%s680_s4 + $0x34] ss:$8 sps:$4 sm:$0xff]  }
   0x5   :  { %85 = vmatpush1.bf16.msra.mxu0 %v449_v4  ;;  %333 = vmatprep.subr.bf16.mxu1 %v453_v7  ;;  %v459_v11 = vld [vmem:[%s680_s4 + $0x24] ss:$8 sps:$4 sm:$0xff]   ;;  %v461_v12 = vld [vmem:[%s680_s4 + $0x20] ss:$8 sps:$4 sm:$0xff]   ;;  %v464_v14 = vld [vmem:[%s680_s4 + $0x30] ss:$8 sps:$4 sm:$0xff]  }
   0x6   :  { %86 = vmatprep.subr.bf16.mxu0 %v450_v5  ;;  %334 = vmatpush1.bf16.msra.mxu1 %v455_v8  ;;  %v465_v15 = vld [vmem:[%s680_s4 + $0x44] ss:$8 sps:$4 sm:$0xff]   ;;  %v467_v16 = vld [vmem:[%s680_s4 + $0x40] ss:$8 sps:$4 sm:$0xff]   ;;  %v468_v17 = vld [vmem:[%s680_s4 + $0x54] ss:$8 sps:$4 sm:$0xff]  }
   0x7   :  { %335 = vmatprep.subr.bf16.mxu1 %v456_v9  ;;  %v470_v18 = vld [vmem:[%s680_s4 + $0x50] ss:$8 sps:$4 sm:$0xff]   ;;  %v471_v19 = vld [vmem:[%s680_s4 + $0x64] ss:$8 sps:$4 sm:$0xff]   ;;  %v473_v20 = vld [vmem:[%s680_s4 + $0x60] ss:$8 sps:$4 sm:$0xff]  }
   0x8   :  { %v474_v21 = vld [vmem:[%s680_s4 + $0x74] ss:$8 sps:$4 sm:$0xff]   ;;  %v476_v22 = vld [vmem:[%s680_s4 + $0x70] ss:$8 sps:$4 sm:$0xff]   ;;  %v477_v23 = vld [vmem:[%s680_s4 + $0x84] ss:$8 sps:$4 sm:$0xff]  }
   0x9   :  { %87 = vmatpush1.bf16.msra.mxu0 %v452_v6  ;;  %v479_v24 = vld [vmem:[%s680_s4 + $0x80] ss:$8 sps:$4 sm:$0xff]   ;;  %v480_v25 = vld [vmem:[%s680_s4 + $0x94] ss:$8 sps:$4 sm:$0xff]   ;;  %v482_v26 = vld [vmem:[%s680_s4 + $0x90] ss:$8 sps:$4 sm:$0xff]  }
   0xa   :  { %336 = vmatpush1.bf16.msra.mxu1 %v458_v10  ;;  %v483_v27 = vld [vmem:[%s680_s4 + $0xa4] ss:$8 sps:$4 sm:$0xff]   ;;  %v485_v28 = vld [vmem:[%s680_s4 + $0xa0] ss:$8 sps:$4 sm:$0xff]   ;;  %v486_v29 = vld [vmem:[%s680_s4 + $0xb4] ss:$8 sps:$4 sm:$0xff]  }
   0xb   :  { %337 = vmatprep.subr.bf16.mxu1 %v459_v11  ;;  %v488_v30 = vld [vmem:[%s680_s4 + $0xb0] ss:$8 sps:$4 sm:$0xff]   ;;  %v489_v31 = vld [vmem:[%s680_s4 + $0xc4] ss:$8 sps:$4 sm:$0xff]   ;;  %v491_v32 = vld [vmem:[%s680_s4 + $0xc0] ss:$8 sps:$4 sm:$0xff]  }
   0xc   :  { %v492_v33 = vld [vmem:[%s680_s4 + $0xd4] ss:$8 sps:$4 sm:$0xff]   ;;  %v494_v34 = vld [vmem:[%s680_s4 + $0xd0] ss:$8 sps:$4 sm:$0xff]   ;;  %v495_v38 = vld [vmem:[%s680_s4 + $0xe4] ss:$8 sps:$4 sm:$0xff]  }
   0xd   :  { %v497_v39 = vld [vmem:[%s680_s4 + $0xe0] ss:$8 sps:$4 sm:$0xff]   ;;  %v498_v40 = vld [vmem:[%s680_s4 + $0xf4] ss:$8 sps:$4 sm:$0xff]   ;;  %v500_v41 = vld [vmem:[%s680_s4 + $0xf0] ss:$8 sps:$4 sm:$0xff]  }
   0xe   :  { %338 = vmatpush1.bf16.msra.mxu1 %v461_v12  ;;  %v52_v44 = vsub.s32 0, %v51_v43  ;;  %v48_v45 = vld [vmem:[%s681_s3] sm:$0x3]  ;;  %v56_v46 = vsub.s32 1, %v51_v43  ;;  %14 = vst [vmem:[#allocation3] sm:$0x1] %v13_v59 }
   0xf   :  { %339 = vmatprep.subr.bf16.mxu1 %v462_v13  ;;  %v161_v60 = vld [vmem:[%s683_s5] sm:$0x3] }
  0x10   :  { %v53_v47 = vrot.slane %v48_v45, %v52_v44  ;;  %v57_v48 = vrot.slane %v48_v45, %v56_v46  ;;  %v166_v61 = vrot.slane %v161_v60, %v52_v44  ;;  %v376_v62 = vld [vmem:[%s684_s6] sm:$0x3]  ;;  %v170_v63 = vrot.slane %v161_v60, %v56_v46 }
  0x11   :  { %v381_v2 = vrot.slane %v376_v62, %v52_v44  ;;  %v385_v5 = vrot.slane %v376_v62, %v56_v46 }
  0x12   :  { %340 = vmatpush1.bf16.msra.mxu1 %v464_v14 }
  0x13   :  { %341 = vmatprep.subr.bf16.mxu1 %v465_v15 }
  0x15   :  { %v444_v13 = vld [vmem:[#allocation3] ss:$0 sm:$0xff] }
  0x16   :  { %342 = vmatpush1.bf16.msra.mxu1 %v467_v16 }
  0x17   :  { %343 = vmatprep.subr.bf16.mxu1 %v468_v17 }
  0x1a   :  { %344 = vmatpush1.bf16.msra.mxu1 %v470_v18 }
  0x1b   :  { %345 = vmatprep.subr.bf16.mxu1 %v471_v19 }
  0x1e   :  { %346 = vmatpush1.bf16.msra.mxu1 %v473_v20 }
  0x1f   :  { %347 = vmatprep.subr.bf16.mxu1 %v474_v21 }
  0x22   :  { %348 = vmatpush1.bf16.msra.mxu1 %v476_v22 }
  0x23   :  { %349 = vmatprep.subr.bf16.mxu1 %v477_v23 }
  0x26   :  { %350 = vmatpush1.bf16.msra.mxu1 %v479_v24 }
  0x27   :  { %351 = vmatprep.subr.bf16.mxu1 %v480_v25 }
  0x2a   :  { %352 = vmatpush1.bf16.msra.mxu1 %v482_v26 }
  0x2b   :  { %353 = vmatprep.subr.bf16.mxu1 %v483_v27 }
  0x2e   :  { %354 = vmatpush1.bf16.msra.mxu1 %v485_v28 }
  0x2f   :  { %355 = vmatprep.subr.bf16.mxu1 %v486_v29 }
  0x32   :  { %356 = vmatpush1.bf16.msra.mxu1 %v488_v30 }
  0x33   :  { %357 = vmatprep.subr.bf16.mxu1 %v489_v31 }
  0x36   :  { %358 = vmatpush1.bf16.msra.mxu1 %v491_v32 }
  0x37   :  { %359 = vmatprep.subr.bf16.mxu1 %v492_v33 }
  0x3a   :  { %360 = vmatpush1.bf16.msra.mxu1 %v494_v34 }
  0x3b   :  { %361 = vmatprep.subr.bf16.mxu1 %v495_v38 }
  0x3e   :  { %362 = vmatpush1.bf16.msra.mxu1 %v497_v39 }
  0x3f   :  { %363 = vmatprep.subr.bf16.mxu1 %v498_v40 }
  0x42   :  { %364 = vmatpush1.bf16.msra.mxu1 %v500_v41 }
  0x74   :  { %v38_v35 = vpop.permute.xlu0 %37 }
  0x75   :  { %41 = vst.msk [vmem:[#allocation2] sm:$0xff] %vm40_vm1, %v38_v35 }
  0x7c   :  { %v42_v36 = vld [vmem:[#allocation2] sm:$0xff] }
  0x7d   :  { %v43_v37 = vpack.c.bf16 %v42_v36, %v42_v36 }
  0x7f   :  { %411 = vmatmul.mubr.msk.bf16.vlgmr.msra.gmra.mrb[0].mxu0 %vm80_vm2, %v43_v37 }
 0x152   :  { %v118_v49 = vpop.f32.mrb[0].mxu0 }
 0x153   :  { %v119_v50 = vadd.f32 %v118_v49, %v53_v47  ;;  %v120_v51 = vpop.f32.mrb[1].mxu0 }
 0x154   :  { %v121_v52 = vadd.f32 %v120_v51, %v57_v48  ;;  %v122_v53 = vpop.f32.mrb[2].mxu0 }
 0x155   :  { %v125_v54 = vmax.f32 %v119_v50, 0.0  ;;  %v123_v55 = vpop.f32.mrb[3].mxu0 }
 0x156   :  { %v126_v56 = vmax.f32 %v121_v52, 0.0 }
 0x157   :  { %v127_v58 = vpack.c.bf16 %v125_v54, %v125_v54 }
 0x158   :  { %v128_v57 = vpack.c.bf16 %v126_v56, %v126_v56 }
 0x15a   :  { %365 = vmatprep.mubr.bf16.mxu1 %v128_v57 }
 0x15b   :  { %366 = vmatmul.mubr.bf16.vlgmr.msra.gmra.mrb[0].mxu1 %v127_v58 }
 0x22e   :  { %v367_v0 = vpop.f32.mrb[0].mxu1 }
 0x22f   :  { %v368_v1 = vadd.f32 %v367_v0, %v166_v61  ;;  %v369_v3 = vpop.f32.mrb[1].mxu1 }
 0x230   :  { %v370_v4 = vadd.f32 %v369_v3, %v170_v63  ;;  %v371_v6 = vpop.f32.mrb[2].mxu1 }
 0x231   :  { %v374_v7 = vmax.f32 %v368_v1, 0.0  ;;  %v372_v8 = vpop.f32.mrb[3].mxu1 }
 0x232   :  { %v375_v9 = vmax.f32 %v370_v4, 0.0 }
 0x233   :  { %v388_v10 = vmul.f32 %v381_v2, %v374_v7 }
 0x234   :  { %v389_v11 = vmul.f32 %v385_v5, %v375_v9 }
 0x236   :  { %v390_v12 = vadd.f32 %v389_v11, %v388_v10 }
 0x238   :  { %391 = vadd.xlane.f32.xlu0 %v390_v12 }
 0x2c5   :  { %v392_v14 = vpop.xlane.xlu0 %391 }
 0x2c6   :  { %v400_v15 = vadd.f32 %v444_v13, %v392_v14 }
 0x2c8   :  { %402 = vst.msk [vmem:[%s685_s8] sm:$0xff] %vm401_vm3, %v400_v15 }

</bundles_post_ra>
